<compile_context>
chip_gen: v7x
topology: tpu7x:2x2x1
jax: 0.10.0
libtpu: 0.0.40
codegen_flags: <defaults>
</compile_context>

<pallas_src>
import functools

import numpy as np
import jax
import jax.numpy as jnp
from jax.experimental import pallas as pl
from jax.experimental.pallas import tpu as pltpu


def _round_up(x, m):
    return ((x + m - 1) // m) * m


def _pick_tile(total, max_tile, base):
    """Largest divisor of `total` that is a multiple of `base` and <= max_tile."""
    if total <= max_tile:
        return total
    t = (max_tile // base) * base
    while t > base and total % t:
        t -= base
    assert total % t == 0
    return t


def _vmem_limit(nbytes):
    # generous headroom, but stay inside v7x's 64 MiB physical VMEM
    return int(min(max(2 * nbytes + (4 << 20), 32 << 20), 64 << 20))


# ---------------------------------------------------------------------------
# Generic tiled matmul + bias:  out = x @ w + b, weight streamed exactly once.
# grid = (N tiles, M tiles): the weight tile index depends only on the OUTER
# axis, so each W tile stays resident in VMEM across the whole inner M sweep.
# ---------------------------------------------------------------------------
def _matmul_bias_kernel(x_ref, w_ref, b_ref, o_ref):
    o_ref[...] = (jnp.dot(x_ref[...], w_ref[...],
                          preferred_element_type=jnp.float32)
                  + b_ref[...]).astype(o_ref.dtype)


def _tiled_matmul_bias(x, w, b, *, out_dtype=jnp.float32,
                       tm_max=512, tn_max=1024):
    M, K = x.shape
    Kw, N = w.shape
    assert K == Kw and b.shape == (1, N)
    tm = _pick_tile(M, tm_max, 16)      # bf16 inputs -> sublane multiple of 16
    tn = _pick_tile(N, tn_max, 128)

    nbytes = (2 * tm * K * x.dtype.itemsize            # x tiles (dbl-buffered)
              + 2 * K * tn * w.dtype.itemsize          # w tiles
              + 2 * tn * b.dtype.itemsize              # bias tiles
              + 2 * tm * tn * np.dtype(out_dtype).itemsize)   # out tiles

    return pl.pallas_call(
        _matmul_bias_kernel,
        out_shape=jax.ShapeDtypeStruct((M, N), out_dtype),
        grid=(N // tn, M // tm),
        in_specs=[
            pl.BlockSpec((tm, K), lambda j, i: (i, 0)),
            pl.BlockSpec((K, tn), lambda j, i: (0, j)),   # W: outer axis only
            pl.BlockSpec((1, tn), lambda j, i: (0, j)),
        ],
        out_specs=pl.BlockSpec((tm, tn), lambda j, i: (i, j)),
        compiler_params=pltpu.CompilerParams(
            dimension_semantics=("parallel", "parallel"),
            vmem_limit_bytes=_vmem_limit(nbytes)),
    )(x, w, b)


# ---------------------------------------------------------------------------
# LSTM recurrence kernel.  grid = (batch tiles ["parallel"], T ["arbitrary"]).
# Per grid step it receives one timestep's pre-computed input-projection block
# (gx) and writes one timestep's hidden-state slab; only h/c live in scratch.
# Gates are pre-reordered to [i, f, o, g].
# ---------------------------------------------------------------------------
def _lstm_step_kernel(gx_ref, w_hh_ref, h_all_ref, h_scr, c_scr, *, hidden):
    H = hidden

    @pl.when(pl.program_id(1) == 0)
    def _():
        h_scr[...] = jnp.zeros_like(h_scr)
        c_scr[...] = jnp.zeros_like(c_scr)

    # Only the h-recurrence matmul sits on the sequential critical path; the
    # x projection was hoisted into one big matmul outside the time loop.
    gates = gx_ref[0] + jnp.dot(
        h_scr[...].astype(jnp.bfloat16), w_hh_ref[...],
        preferred_element_type=jnp.float32)                    # (TB, 4H) f32
    ifo = jax.nn.sigmoid(gates[:, 0:3 * H])     # one contiguous sigmoid pass
    g_g = jnp.tanh(gates[:, 3 * H:4 * H])
    i_g = ifo[:, 0:H]
    f_g = ifo[:, H:2 * H]
    o_g = ifo[:, 2 * H:3 * H]
    c_new = f_g * c_scr[...] + i_g * g_g
    h_new = o_g * jnp.tanh(c_new)
    c_scr[...] = c_new
    h_scr[...] = h_new
    h_all_ref[0] = h_new.astype(h_all_ref.dtype)   # bf16 lane-dense slab


# ---------------------------------------------------------------------------
# One-time parameter preparation (hoisted out of the forward pass).
# ---------------------------------------------------------------------------
_GATE_PERM = (0, 1, 3, 2)   # PyTorch [i, f, g, o]  ->  [i, f, o, g]


def _pad_gate_weight(w, h, h_pad, d_in, d_in_pad):
    w4 = w.reshape(4, h, d_in)[jnp.array(_GATE_PERM)]
    w4 = jnp.pad(w4, ((0, 0), (0, h_pad - h), (0, d_in_pad - d_in)))
    return jnp.transpose(w4.reshape(4 * h_pad, d_in_pad))   # (d_in_pad, 4h_pad)


def _pad_gate_bias(b, h, h_pad):
    b4 = b.reshape(4, h)[jnp.array(_GATE_PERM)]
    b4 = jnp.pad(b4, ((0, 0), (0, h_pad - h)))
    return b4.reshape(1, 4 * h_pad)


def prepare_params(params):
    """Pad / gate-reorder / transpose / bf16-cast the weights exactly once."""
    embed = params["embedding"]            # (V, E)
    w_ih, w_hh = params["w_ih"], params["w_hh"]
    b_ih, b_hh = params["b_ih"], params["b_hh"]
    w_fc, b_fc = params["w_fc"], params["b_fc"]

    V, E = embed.shape
    H = w_hh.shape[1]
    E_pad = _round_up(E, 128)
    H_pad = _round_up(H, 128)
    V_pad = _round_up(V, 128)

    return {
        "E": E, "H": H, "V": V,
        "E_pad": E_pad, "H_pad": H_pad, "V_pad": V_pad,
        "embed_p": jnp.pad(embed, ((0, 0), (0, E_pad - E))).astype(jnp.bfloat16),
        "w_ih_p": _pad_gate_weight(w_ih, H, H_pad, E, E_pad).astype(jnp.bfloat16),
        "w_hh_p": _pad_gate_weight(w_hh, H, H_pad, H, H_pad).astype(jnp.bfloat16),
        "b_gate_p": _pad_gate_bias(b_ih + b_hh, H, H_pad).astype(jnp.float32),
        "w_fc_p": jnp.transpose(
            jnp.pad(w_fc, ((0, V_pad - V), (0, H_pad - H)))).astype(jnp.bfloat16),
        "b_fc_p": jnp.pad(b_fc, (0, V_pad - V))[None, :].astype(jnp.float32),
    }


# ---------------------------------------------------------------------------
# Forward pass (mirrors DecoderRNN.forward).
# ---------------------------------------------------------------------------
def decoder_rnn_forward(features, captions, prepped):
    E, H, V = prepped["E"], prepped["H"], prepped["V"]
    E_pad, H_pad, V_pad = prepped["E_pad"], prepped["H_pad"], prepped["V_pad"]

    B = features.shape[0]
    B_pad = _round_up(B, 16)     # multiple of 16 keeps bf16 sublane tiling clean

    # --- glue (plain JAX): embedding gather, drop last token, prepend image
    #     feature, go time-major, pad batch ---------------------------------
    caps = captions[:, :-1]                                       # (B, L-1)
    emb = jnp.take(prepped["embed_p"], caps, axis=0)              # (B, L-1, E_pad)
    feat = jnp.pad(features, ((0, 0), (0, E_pad - E))).astype(jnp.bfloat16)
    x = jnp.concatenate([feat[:, None, :], emb], axis=1)          # (B, T, E_pad)
    T = x.shape[1]
    x = jnp.transpose(x, (1, 0, 2))                               # (T, B, E_pad)
    x = jnp.pad(x, ((0, 0), (0, B_pad - B), (0, 0)))              # (T, B_pad, E_pad)

    # --- Kernel 1: input projection for ALL timesteps (off the serial path) --
    gx = _tiled_matmul_bias(
        x.reshape(T * B_pad, E_pad), prepped["w_ih_p"], prepped["b_gate_p"],
        out_dtype=jnp.float32)
    gx = gx.reshape(T, B_pad, 4 * H_pad)                          # f32 gates(x)

    # --- Kernel 2: LSTM recurrence, streamed over (batch tiles, time) --------
    if B_pad >= 32 and B_pad % 32 == 0:
        TB = B_pad // 2          # 2 batch tiles -> megacore-parallel on v7x
    else:
        TB = B_pad

    a_bytes = (H_pad * 4 * H_pad * 2            # resident W_hh (bf16)
               + 2 * TB * 4 * H_pad * 4         # gx blocks (f32, dbl-buffered)
               + 2 * TB * H_pad * 2             # h_all out blocks (bf16)
               + 2 * TB * H_pad * 4)            # h / c scratch (f32)

    h_all = pl.pallas_call(
        functools.partial(_lstm_step_kernel, hidden=H_pad),
        out_shape=jax.ShapeDtypeStruct((T, B_pad, H_pad), jnp.bfloat16),
        grid=(B_pad // TB, T),
        in_specs=[
            pl.BlockSpec((1, TB, 4 * H_pad), lambda b, t: (t, b, 0)),
            pl.BlockSpec((H_pad, 4 * H_pad), lambda b, t: (0, 0)),
        ],
        out_specs=pl.BlockSpec((1, TB, H_pad), lambda b, t: (t, b, 0)),
        scratch_shapes=[
            pltpu.VMEM((TB, H_pad), jnp.float32),     # h_t
            pltpu.VMEM((TB, H_pad), jnp.float32),     # c_t
        ],
        compiler_params=pltpu.CompilerParams(
            dimension_semantics=("parallel", "arbitrary"),
            vmem_limit_bytes=_vmem_limit(a_bytes)),
    )(gx, prepped["w_hh_p"])

    # --- Kernel 3: vocab projection (W_fc streamed from HBM exactly once) ----
    logits_p = _tiled_matmul_bias(
        h_all.reshape(T * B_pad, H_pad), prepped["w_fc_p"], prepped["b_fc_p"],
        out_dtype=jnp.float32, tm_max=512, tn_max=1024)

    logits = logits_p.reshape(T, B_pad, V_pad)[:, :B, :V]
    # Batch-first to match the PyTorch module's return layout.
    return jnp.transpose(logits, (1, 0, 2))


# ---------------------------------------------------------------------------
# Pure-JAX reference (f32) for a numerical sanity check.
# ---------------------------------------------------------------------------
def _reference_forward(features, captions, params):
    emb = jnp.take(params["embedding"], captions[:, :-1], axis=0)
    x = jnp.concatenate([features[:, None, :], emb], axis=1)     # (B, T, E)
    Bsz = x.shape[0]
    H = params["w_hh"].shape[1]
    w_ih, w_hh = params["w_ih"], params["w_hh"]
    b = params["b_ih"] + params["b_hh"]

    def step(carry, x_t):
        h, c = carry
        g = x_t @ w_ih.T + h @ w_hh.T + b
        i = jax.nn.sigmoid(g[:, 0 * H:1 * H])
        f = jax.nn.sigmoid(g[:, 1 * H:2 * H])
        gg = jnp.tanh(g[:, 2 * H:3 * H])
        o = jax.nn.sigmoid(g[:, 3 * H:4 * H])
        c = f * c + i * gg
        h = o * jnp.tanh(c)
        return (h, c), h

    init = (jnp.zeros((Bsz, H), jnp.float32), jnp.zeros((Bsz, H), jnp.float32))
    _, hs = jax.lax.scan(step, init, jnp.transpose(x, (1, 0, 2)))
    hs = jnp.transpose(hs, (1, 0, 2))                            # (B, T, H)
    return hs @ params["w_fc"].T + params["b_fc"]


def init_params(key, embed_size, hidden_size, vocab_size):
    """Deterministic synthetic init mimicking PyTorch defaults."""
    ks = jax.random.split(key, 7)
    k_lstm = 1.0 / jnp.sqrt(hidden_size)
    k_fc = 1.0 / jnp.sqrt(hidden_size)
    u = lambda k, shape, bnd: jax.random.uniform(k, shape, jnp.float32, -bnd, bnd)
    return {
        "embedding": jax.random.normal(ks[0], (vocab_size, embed_size), jnp.float32),
        "w_ih": u(ks[1], (4 * hidden_size, embed_size), k_lstm),
        "w_hh": u(ks[2], (4 * hidden_size, hidden_size), k_lstm),
        "b_ih": u(ks[3], (4 * hidden_size,), k_lstm),
        "b_hh": u(ks[4], (4 * hidden_size,), k_lstm),
        "w_fc": u(ks[5], (vocab_size, hidden_size), k_fc),
        "b_fc": u(ks[6], (vocab_size,), k_fc),
    }


if __name__ == "__main__":
    B = 2            # batch
    E = 32           # embed_size
    H = 32           # hidden_size
    V = 64           # vocab_size
    L = 8            # caption length  ->  LSTM sequence length T = L

    key = jax.random.PRNGKey(0)
    k_param, k_feat, k_cap = jax.random.split(key, 3)

    params = init_params(k_param, E, H, V)
    features = jax.random.normal(k_feat, (B, E), jnp.float32)
    captions = jax.random.randint(k_cap, (B, L), 0, V, dtype=jnp.int32)

    prepped = prepare_params(params)      # one-time weight prep, hoisted
    fwd = jax.jit(lambda f, c: decoder_rnn_forward(f, c, prepped))

    logits = fwd(features, captions)
    jax.block_until_ready(logits)

    assert logits.shape == (B, L, V), logits.shape
    assert logits.dtype == jnp.float32
    assert bool(jnp.all(jnp.isfinite(logits)))

    ref = _reference_forward(features, captions, params)
    max_err = float(jnp.max(jnp.abs(logits - ref)))
    # bf16 weights / activations / stored hidden states with f32 accumulation.
    assert max_err < 5e-2, f"max abs err vs reference: {max_err}"

    # TODO(synk): DecoderRNN.sample() (host-side greedy decode loop) is not
    # implemented; only forward() is kernelized.
    print("KERNEL_OK")
</pallas_src>

<mosaic_0001>
module attributes {stable_mosaic.version = 11 : i64} {
  func.func @_matmul_bias_kernel(%arg0: i32, %arg1: i32, %arg2: memref<128x128xbf16, #tpu.memory_space<vmem>>, %arg3: memref<128x512xbf16, #tpu.memory_space<vmem>>, %arg4: memref<1x512xf32, #tpu.memory_space<vmem>>, %arg5: memref<128x512xf32, #tpu.memory_space<vmem>>) attributes {dimension_semantics = [#tpu.dimension_semantics<parallel>, #tpu.dimension_semantics<parallel>], iteration_bounds = array<i64: 1, 1>, scalar_prefetch = 0 : i64, scratch_operands = 0 : i64, tpu.core_type = #tpu.core_type<tc>, window_params = [{transform_indices = @transform_0, window_bounds = array<i64: 128, 128>}, {transform_indices = @transform_1, window_bounds = array<i64: 128, 512>}, {transform_indices = @transform_2, window_bounds = array<i64: 1, 512>}, {transform_indices = @transform_3, window_bounds = array<i64: 128, 512>}]} {
    %c0 = arith.constant 0 : index
    %c0_0 = arith.constant 0 : index
    %0 = vector.load %arg2[%c0, %c0_0] : memref<128x128xbf16, #tpu.memory_space<vmem>>, vector<128x128xbf16>
    %c0_1 = arith.constant 0 : index
    %c0_2 = arith.constant 0 : index
    %1 = vector.load %arg3[%c0_1, %c0_2] : memref<128x512xbf16, #tpu.memory_space<vmem>>, vector<128x512xbf16>
    %cst = arith.constant dense<0.000000e+00> : vector<128x512xf32>
    %2 = tpu.matmul %0, %1, %cst {dimension_numbers = #tpu.dot_dimension_numbers<[1], [0], [0], [1], [0, 0, 1, 1], [], []>} : vector<128x128xbf16>, vector<128x512xbf16>, vector<128x512xf32> -> vector<128x512xf32>
    %c0_3 = arith.constant 0 : index
    %c0_4 = arith.constant 0 : index
    %3 = vector.load %arg4[%c0_3, %c0_4] : memref<1x512xf32, #tpu.memory_space<vmem>>, vector<1x512xf32>
    %4 = vector.broadcast %3 : vector<1x512xf32> to vector<128x512xf32>
    %5 = arith.addf %2, %4 : vector<128x512xf32>
    %c0_5 = arith.constant 0 : index
    %c0_6 = arith.constant 0 : index
    %6 = vector.load %arg5[%c0_5, %c0_6] : memref<128x512xf32, #tpu.memory_space<vmem>>, vector<128x512xf32>
    tpu.vector_store %arg5[%c0_5, %c0_6], %5 {strides = array<i32>} : memref<128x512xf32, #tpu.memory_space<vmem>>, vector<128x512xf32>,
    return
  }
  func.func @transform_0(%arg0: i32, %arg1: i32) -> (i32, i32) {
    %c0_i32 = arith.constant 0 : i32
    %c0_i32_0 = arith.constant 0 : i32
    return %arg1, %c0_i32 : i32, i32
  }
  func.func @transform_1(%arg0: i32, %arg1: i32) -> (i32, i32) {
    %c0_i32 = arith.constant 0 : i32
    %c0_i32_0 = arith.constant 0 : i32
    return %c0_i32, %arg0 : i32, i32
  }
  func.func @transform_2(%arg0: i32, %arg1: i32) -> (i32, i32) {
    %c0_i32 = arith.constant 0 : i32
    %c0_i32_0 = arith.constant 0 : i32
    return %c0_i32, %arg0 : i32, i32
  }
  func.func @transform_3(%arg0: i32, %arg1: i32) -> (i32, i32) {
    %c0_i32 = arith.constant 0 : i32
    return %arg1, %arg0 : i32, i32
  }
}

module attributes {stable_mosaic.version = 11 : i64} {
  func.func @_matmul_bias_kernel(%arg0: i32, %arg1: i32, %arg2: memref<128x128xbf16, #tpu.memory_space<vmem>>, %arg3: memref<128x128xbf16, #tpu.memory_space<vmem>>, %arg4: memref<1x128xf32, #tpu.memory_space<vmem>>, %arg5: memref<128x128xf32, #tpu.memory_space<vmem>>) attributes {dimension_semantics = [#tpu.dimension_semantics<parallel>, #tpu.dimension_semantics<parallel>], iteration_bounds = array<i64: 1, 1>, scalar_prefetch = 0 : i64, scratch_operands = 0 : i64, tpu.core_type = #tpu.core_type<tc>, window_params = [{transform_indices = @transform_0, window_bounds = array<i64: 128, 128>}, {transform_indices = @transform_1, window_bounds = array<i64: 128, 128>}, {transform_indices = @transform_2, window_bounds = array<i64: 1, 128>}, {transform_indices = @transform_3, window_bounds = array<i64: 128, 128>}]} {
    %c0 = arith.constant 0 : index
    %c0_0 = arith.constant 0 : index
    %0 = vector.load %arg2[%c0, %c0_0] : memref<128x128xbf16, #tpu.memory_space<vmem>>, vector<128x128xbf16>
    %c0_1 = arith.constant 0 : index
    %c0_2 = arith.constant 0 : index
    %1 = vector.load %arg3[%c0_1, %c0_2] : memref<128x128xbf16, #tpu.memory_space<vmem>>, vector<128x128xbf16>
    %cst = arith.constant dense<0.000000e+00> : vector<128x128xf32>
    %2 = tpu.matmul %0, %1, %cst {dimension_numbers = #tpu.dot_dimension_numbers<[1], [0], [0], [1], [0, 0, 1, 1], [], []>} : vector<128x128xbf16>, vector<128x128xbf16>, vector<128x128xf32> -> vector<128x128xf32>
    %c0_3 = arith.constant 0 : index
    %c0_4 = arith.constant 0 : index
    %3 = vector.load %arg4[%c0_3, %c0_4] : memref<1x128xf32, #tpu.memory_space<vmem>>, vector<1x128xf32>
    %4 = vector.broadcast %3 : vector<1x128xf32> to vector<128x128xf32>
    %5 = arith.addf %2, %4 : vector<128x128xf32>
    %c0_5 = arith.constant 0 : index
    %c0_6 = arith.constant 0 : index
    %6 = vector.load %arg5[%c0_5, %c0_6] : memref<128x128xf32, #tpu.memory_space<vmem>>, vector<128x128xf32>
    tpu.vector_store %arg5[%c0_5, %c0_6], %5 {strides = array<i32>} : memref<128x128xf32, #tpu.memory_space<vmem>>, vector<128x128xf32>,
    return
  }
  func.func @transform_0(%arg0: i32, %arg1: i32) -> (i32, i32) {
    %c0_i32 = arith.constant 0 : i32
    %c0_i32_0 = arith.constant 0 : i32
    return %arg1, %c0_i32 : i32, i32
  }
  func.func @transform_1(%arg0: i32, %arg1: i32) -> (i32, i32) {
    %c0_i32 = arith.constant 0 : i32
    %c0_i32_0 = arith.constant 0 : i32
    return %c0_i32, %arg0 : i32, i32
  }
  func.func @transform_2(%arg0: i32, %arg1: i32) -> (i32, i32) {
    %c0_i32 = arith.constant 0 : i32
    %c0_i32_0 = arith.constant 0 : i32
    return %c0_i32, %arg0 : i32, i32
  }
  func.func @transform_3(%arg0: i32, %arg1: i32) -> (i32, i32) {
    %c0_i32 = arith.constant 0 : i32
    return %arg1, %arg0 : i32, i32
  }
}

module attributes {stable_mosaic.version = 11 : i64} {
  func.func @_lstm_step_kernel(%arg0: i32, %arg1: i32, %arg2: memref<1x16x512xf32, #tpu.memory_space<vmem>>, %arg3: memref<128x512xbf16, #tpu.memory_space<vmem>>, %arg4: memref<1x16x128xbf16, #tpu.memory_space<vmem>>, %arg5: memref<16x128xf32, #tpu.memory_space<vmem>>, %arg6: memref<16x128xf32, #tpu.memory_space<vmem>>) attributes {dimension_semantics = [#tpu.dimension_semantics<parallel>, #tpu.dimension_semantics<arbitrary>], iteration_bounds = array<i64: 1, 8>, scalar_prefetch = 0 : i64, scratch_operands = 2 : i64, tpu.core_type = #tpu.core_type<tc>, window_params = [{transform_indices = @transform_0, window_bounds = array<i64: 1, 16, 512>}, {pipeline_mode = #tpu.pipeline_mode<synchronous>, transform_indices = @transform_1, window_bounds = array<i64: 128, 512>}, {transform_indices = @transform_2, window_bounds = array<i64: 1, 16, 128>}]} {
    %c0_i32 = arith.constant 0 : i32
    %0 = arith.cmpi eq, %arg1, %c0_i32 : i32
    %1 = arith.extui %0 : i1 to i32
    %c0_i32_0 = arith.constant 0 : i32
    %2 = arith.cmpi ne, %1, %c0_i32_0 : i32
    scf.if %2 {
      %cst_17 = arith.constant 0.000000e+00 : f32
      %33 = vector.broadcast %cst_17 : f32 to vector<16x128xf32>
      %c0_18 = arith.constant 0 : index
      %c0_19 = arith.constant 0 : index
      %34 = vector.load %arg5[%c0_18, %c0_19] : memref<16x128xf32, #tpu.memory_space<vmem>>, vector<16x128xf32>
      tpu.vector_store %arg5[%c0_18, %c0_19], %33 {strides = array<i32>} : memref<16x128xf32, #tpu.memory_space<vmem>>, vector<16x128xf32>,
      %cst_20 = arith.constant 0.000000e+00 : f32
      %35 = vector.broadcast %cst_20 : f32 to vector<16x128xf32>
      %c0_21 = arith.constant 0 : index
      %c0_22 = arith.constant 0 : index
      %36 = vector.load %arg6[%c0_21, %c0_22] : memref<16x128xf32, #tpu.memory_space<vmem>>, vector<16x128xf32>
      tpu.vector_store %arg6[%c0_21, %c0_22], %35 {strides = array<i32>} : memref<16x128xf32, #tpu.memory_space<vmem>>, vector<16x128xf32>,
    } else {
    }
    %c0 = arith.constant 0 : index
    %c0_1 = arith.constant 0 : index
    %c0_2 = arith.constant 0 : index
    %3 = vector.load %arg2[%c0, %c0_1, %c0_2] : memref<1x16x512xf32, #tpu.memory_space<vmem>>, vector<1x16x512xf32>
    %4 = vector.shape_cast %3 : vector<1x16x512xf32> to vector<16x512xf32>
    %c0_3 = arith.constant 0 : index
    %c0_4 = arith.constant 0 : index
    %5 = vector.load %arg5[%c0_3, %c0_4] : memref<16x128xf32, #tpu.memory_space<vmem>>, vector<16x128xf32>
    %6 = arith.truncf %5 : vector<16x128xf32> to vector<16x128xbf16>
    %c0_5 = arith.constant 0 : index
    %c0_6 = arith.constant 0 : index
    %7 = vector.load %arg3[%c0_5, %c0_6] : memref<128x512xbf16, #tpu.memory_space<vmem>>, vector<128x512xbf16>
    %cst = arith.constant dense<0.000000e+00> : vector<16x512xf32>
    %8 = tpu.matmul %6, %7, %cst {dimension_numbers = #tpu.dot_dimension_numbers<[1], [0], [0], [1], [0, 0, 1, 1], [], []>} : vector<16x128xbf16>, vector<128x512xbf16>, vector<16x512xf32> -> vector<16x512xf32>
    %9 = arith.addf %4, %8 : vector<16x512xf32>
    %10 = vector.extract_strided_slice %9 {offsets = [0, 0], sizes = [16, 384], strides = [1, 1]} : vector<16x512xf32> to vector<16x384xf32>
    %11 = arith.negf %10 : vector<16x384xf32>
    %12 = math.exp %11 : vector<16x384xf32>
    %cst_7 = arith.constant 1.000000e+00 : f32
    %13 = vector.broadcast %cst_7 : f32 to vector<16x384xf32>
    %14 = arith.addf %13, %12 : vector<16x384xf32>
    %15 = arith.divf %13, %14 : vector<16x384xf32>
    %16 = vector.extract_strided_slice %9 {offsets = [0, 384], sizes = [16, 128], strides = [1, 1]} : vector<16x512xf32> to vector<16x128xf32>
    %17 = math.tanh %16 : vector<16x128xf32>
    %18 = vector.extract_strided_slice %15 {offsets = [0, 0], sizes = [16, 128], strides = [1, 1]} : vector<16x384xf32> to vector<16x128xf32>
    %19 = vector.extract_strided_slice %15 {offsets = [0, 128], sizes = [16, 128], strides = [1, 1]} : vector<16x384xf32> to vector<16x128xf32>
    %20 = vector.extract_strided_slice %15 {offsets = [0, 256], sizes = [16, 128], strides = [1, 1]} : vector<16x384xf32> to vector<16x128xf32>
    %c0_8 = arith.constant 0 : index
    %c0_9 = arith.constant 0 : index
    %21 = vector.load %arg6[%c0_8, %c0_9] : memref<16x128xf32, #tpu.memory_space<vmem>>, vector<16x128xf32>
    %22 = arith.mulf %19, %21 : vector<16x128xf32>
    %23 = arith.mulf %18, %17 : vector<16x128xf32>
    %24 = arith.addf %22, %23 : vector<16x128xf32>
    %25 = math.tanh %24 : vector<16x128xf32>
    %26 = arith.mulf %20, %25 : vector<16x128xf32>
    %c0_10 = arith.constant 0 : index
    %c0_11 = arith.constant 0 : index
    %27 = vector.load %arg6[%c0_10, %c0_11] : memref<16x128xf32, #tpu.memory_space<vmem>>, vector<16x128xf32>
    tpu.vector_store %arg6[%c0_10, %c0_11], %24 {strides = array<i32>} : memref<16x128xf32, #tpu.memory_space<vmem>>, vector<16x128xf32>,
    %c0_12 = arith.constant 0 : index
    %c0_13 = arith.constant 0 : index
    %28 = vector.load %arg5[%c0_12, %c0_13] : memref<16x128xf32, #tpu.memory_space<vmem>>, vector<16x128xf32>
    tpu.vector_store %arg5[%c0_12, %c0_13], %26 {strides = array<i32>} : memref<16x128xf32, #tpu.memory_space<vmem>>, vector<16x128xf32>,
    %29 = arith.truncf %26 : vector<16x128xf32> to vector<16x128xbf16>
    %c0_14 = arith.constant 0 : index
    %c0_15 = arith.constant 0 : index
    %c0_16 = arith.constant 0 : index
    %30 = vector.load %arg4[%c0_14, %c0_15, %c0_16] : memref<1x16x128xbf16, #tpu.memory_space<vmem>>, vector<1x16x128xbf16>
    %31 = vector.shape_cast %30 : vector<1x16x128xbf16> to vector<16x128xbf16>
    %32 = vector.shape_cast %29 : vector<16x128xbf16> to vector<1x16x128xbf16>
    tpu.vector_store %arg4[%c0_14, %c0_15, %c0_16], %32 {strides = array<i32>} : memref<1x16x128xbf16, #tpu.memory_space<vmem>>, vector<1x16x128xbf16>,
    return
  }
  func.func @transform_0(%arg0: i32, %arg1: i32) -> (i32, i32, i32) {
    %c0_i32 = arith.constant 0 : i32
    %c0_i32_0 = arith.constant 0 : i32
    return %arg1, %arg0, %c0_i32 : i32, i32, i32
  }
  func.func @transform_1(%arg0: i32, %arg1: i32) -> (i32, i32) {
    %c0_i32 = arith.constant 0 : i32
    %c0_i32_0 = arith.constant 0 : i32
    %c0_i32_1 = arith.constant 0 : i32
    return %c0_i32, %c0_i32_0 : i32, i32
  }
  func.func @transform_2(%arg0: i32, %arg1: i32) -> (i32, i32, i32) {
    %c0_i32 = arith.constant 0 : i32
    %c0_i32_0 = arith.constant 0 : i32
    return %arg1, %arg0, %c0_i32 : i32, i32, i32
  }
}

</mosaic_0001>

<bundles_post_ra>
// kernel: _lambda_.5
= control target key start
LH: loop header
LB: loop body
LE: loop exit
PB: predicated region body
PF: predicated region fallthrough
CT: control target
= control target key end

     0   :  { %s483_s1 = inlined_call_operand.vmem [shape: bf16[128,128], index: 1, kind: input, shape index: {}]   ;;  %s484_s0 = inlined_call_operand.vmem [shape: bf16[128,128], index: 0, kind: input, shape index: {}]   ;;  %s485_s2 = inlined_call_operand.vmem [shape: f32[1,128], index: 2, kind: input, shape index: {}]   ;;  %s486_s3 = inlined_call_operand.vmem [shape: f32[128,128], index: 3, kind: output, shape index: {}]  }
   0x1   :  { %v348_v0 = vld [vmem:[%s483_s1] sm:$0xff]   ;;  %v349_v1 = vld [vmem:[%s483_s1 + $0x8] sm:$0xff]   ;;  %v350_v2 = vld [vmem:[%s483_s1 + $0x10] sm:$0xff]  }
   0x2   :  { %300 = vmatprep.subr.bf16.mxu0 %v348_v0  ;;  %332 = vmatprep.subr.bf16.mxu1 %v348_v0  ;;  %v351_v3 = vld [vmem:[%s483_s1 + $0x18] sm:$0xff]   ;;  %v356_v4 = vld [vmem:[%s484_s0] sm:$0xff]   ;;  %v353_v7 = vld [vmem:[%s483_s1 + $0x28] sm:$0xff]  }
   0x3   :  { %301 = vmatpush3.bf16.msra.mxu0 %v348_v0  ;;  %340 = vmatpush3.bf16.msra.mxu1 %v348_v0  ;;  %v357_v5 = vld [vmem:[%s484_s0 + $0x20] sm:$0xff]   ;;  %v354_v8 = vld [vmem:[%s483_s1 + $0x30] sm:$0xff]   ;;  %v355_v9 = vld [vmem:[%s483_s1 + $0x38] sm:$0xff]  }
   0x4   :  { %302 = vmatprep.subr.bf16.mxu0 %v349_v1  ;;  %333 = vmatprep.subr.bf16.mxu1 %v349_v1  ;;  %v352_v6 = vld [vmem:[%s483_s1 + $0x20] sm:$0xff]   ;;  %v358_v10 = vld [vmem:[%s484_s0 + $0x8] sm:$0xff]   ;;  %v360_v12 = vld [vmem:[%s484_s0 + $0x10] sm:$0xff]  }
   0x5   :  { %316 = vmatprep.mubr.bf16.mxu0 %v356_v4  ;;  %324 = vmatprep.mubr.bf16.mxu1 %v357_v5  ;;  %v359_v11 = vld [vmem:[%s484_s0 + $0x28] sm:$0xff]   ;;  %v361_v13 = vld [vmem:[%s484_s0 + $0x30] sm:$0xff]   ;;  %v362_v14 = vld [vmem:[%s484_s0 + $0x18] sm:$0xff]  }
   0x6   :  { %v363_v15 = vld [vmem:[%s484_s0 + $0x38] sm:$0xff]   ;;  %v267_v16 = vld [vmem:[%s485_s2] ss:$0 sm:$0xff] }
   0x7   :  { %303 = vmatpush3.bf16.msra.mxu0 %v349_v1  ;;  %341 = vmatpush3.bf16.msra.mxu1 %v349_v1 }
   0x8   :  { %304 = vmatprep.subr.bf16.mxu0 %v350_v2  ;;  %334 = vmatprep.subr.bf16.mxu1 %v350_v2 }
   0xb   :  { %305 = vmatpush3.bf16.msra.mxu0 %v350_v2  ;;  %342 = vmatpush3.bf16.msra.mxu1 %v350_v2 }
   0xc   :  { %306 = vmatprep.subr.bf16.mxu0 %v351_v3  ;;  %335 = vmatprep.subr.bf16.mxu1 %v351_v3 }
   0xf   :  { %307 = vmatpush3.bf16.msra.mxu0 %v351_v3  ;;  %343 = vmatpush3.bf16.msra.mxu1 %v351_v3 }
  0x10   :  { %308 = vmatprep.subr.bf16.mxu0 %v352_v6  ;;  %336 = vmatprep.subr.bf16.mxu1 %v352_v6 }
  0x13   :  { %309 = vmatpush3.bf16.msra.mxu0 %v352_v6  ;;  %344 = vmatpush3.bf16.msra.mxu1 %v352_v6 }
  0x14   :  { %310 = vmatprep.subr.bf16.mxu0 %v353_v7  ;;  %337 = vmatprep.subr.bf16.mxu1 %v353_v7 }
  0x17   :  { %311 = vmatpush3.bf16.msra.mxu0 %v353_v7  ;;  %345 = vmatpush3.bf16.msra.mxu1 %v353_v7 }
  0x18   :  { %312 = vmatprep.subr.bf16.mxu0 %v354_v8  ;;  %338 = vmatprep.subr.bf16.mxu1 %v354_v8 }
  0x1b   :  { %313 = vmatpush3.bf16.msra.mxu0 %v354_v8  ;;  %346 = vmatpush3.bf16.msra.mxu1 %v354_v8 }
  0x1c   :  { %314 = vmatprep.subr.bf16.mxu0 %v355_v9  ;;  %339 = vmatprep.subr.bf16.mxu1 %v355_v9 }
  0x1f   :  { %315 = vmatpush3.bf16.msra.mxu0 %v355_v9  ;;  %347 = vmatpush3.bf16.msra.mxu1 %v355_v9 }
  0x22   :  { %317 = vmatmul.mubr.bf16.vlgmr.msra.gmra.mrb[0].mxu0 %v358_v10  ;;  %325 = vmatmul.mubr.bf16.vlgmr.msra.gmra.mrb[0].mxu1 %v359_v11 }
  0x23   :  { %320 = vmatprep.mubr.bf16.mxu0 %v360_v12  ;;  %328 = vmatprep.mubr.bf16.mxu1 %v361_v13 }
  0x2a   :  { %321 = vmatmul.mubr.bf16.gmra.mrb[4].mxu0 %v362_v14  ;;  %329 = vmatmul.mubr.bf16.gmra.mrb[4].mxu1 %v363_v15 }
  0xf5   :  { %v318_v17 = vpop.f32.mrb[0].mxu0  ;;  %v326_v18 = vpop.f32.mrb[0].mxu1 }
  0xf6   :  { %v193_v19 = vadd.f32 %v318_v17, %v267_v16  ;;  %v225_v20 = vadd.f32 %v326_v18, %v267_v16  ;;  %v184_v21 = vpop.f32.mrb[1].mxu0  ;;  %v216_v22 = vpop.f32.mrb[1].mxu1 }
  0xf7   :  { %v185_v23 = vadd.f32 %v267_v16, %v184_v21  ;;  %v217_v24 = vadd.f32 %v267_v16, %v216_v22  ;;  %v319_v25 = vpop.f32.mrb[2].mxu0  ;;  %v327_v26 = vpop.f32.mrb[2].mxu1 }
  0xf8   :  { %249 = vst [vmem:[%s486_s3 + $0x10] sm:$0xff] %v193_v19  ;;  %257 = vst [vmem:[%s486_s3 + $0x50] sm:$0xff] %v225_v20  ;;  %v196_v27 = vadd.f32 %v319_v25, %v267_v16  ;;  %v228_v28 = vadd.f32 %v327_v26, %v267_v16  ;;  %v187_v29 = vpop.f32.mrb[3].mxu0  ;;  %v219_v30 = vpop.f32.mrb[3].mxu1 }
  0xf9   :  { %247 = vst [vmem:[%s486_s3] sm:$0xff] %v185_v23  ;;  %255 = vst [vmem:[%s486_s3 + $0x40] sm:$0xff] %v217_v24  ;;  %v188_v31 = vadd.f32 %v267_v16, %v187_v29  ;;  %v220_v32 = vadd.f32 %v267_v16, %v219_v30 }
  0xfa   :  { %250 = vst [vmem:[%s486_s3 + $0x18] sm:$0xff] %v196_v27  ;;  %258 = vst [vmem:[%s486_s3 + $0x58] sm:$0xff] %v228_v28 }
  0xfb   :  { %248 = vst [vmem:[%s486_s3 + $0x8] sm:$0xff] %v188_v31  ;;  %256 = vst [vmem:[%s486_s3 + $0x48] sm:$0xff] %v220_v32 }
  0xfd   :  { %v322_v33 = vpop.f32.mrb[4].mxu0  ;;  %v330_v34 = vpop.f32.mrb[4].mxu1 }
  0xfe   :  { %v209_v35 = vadd.f32 %v322_v33, %v267_v16  ;;  %v241_v36 = vadd.f32 %v330_v34, %v267_v16  ;;  %v200_v37 = vpop.f32.mrb[5].mxu0  ;;  %v232_v38 = vpop.f32.mrb[5].mxu1 }
  0xff   :  { %v201_v39 = vadd.f32 %v267_v16, %v200_v37  ;;  %v233_v40 = vadd.f32 %v267_v16, %v232_v38  ;;  %v323_v41 = vpop.f32.mrb[6].mxu0  ;;  %v331_v42 = vpop.f32.mrb[6].mxu1 }
 0x100   :  { %253 = vst [vmem:[%s486_s3 + $0x30] sm:$0xff] %v209_v35  ;;  %261 = vst [vmem:[%s486_s3 + $0x70] sm:$0xff] %v241_v36  ;;  %v212_v43 = vadd.f32 %v323_v41, %v267_v16  ;;  %v244_v44 = vadd.f32 %v331_v42, %v267_v16  ;;  %v203_v45 = vpop.f32.mrb[7].mxu0  ;;  %v235_v46 = vpop.f32.mrb[7].mxu1 }
 0x101   :  { %251 = vst [vmem:[%s486_s3 + $0x20] sm:$0xff] %v201_v39  ;;  %259 = vst [vmem:[%s486_s3 + $0x60] sm:$0xff] %v233_v40  ;;  %v204_v47 = vadd.f32 %v267_v16, %v203_v45  ;;  %v236_v48 = vadd.f32 %v267_v16, %v235_v46 }
 0x102   :  { %254 = vst [vmem:[%s486_s3 + $0x38] sm:$0xff] %v212_v43  ;;  %262 = vst [vmem:[%s486_s3 + $0x78] sm:$0xff] %v244_v44 }
 0x103   :  { %252 = vst [vmem:[%s486_s3 + $0x28] sm:$0xff] %v204_v47  ;;  %260 = vst [vmem:[%s486_s3 + $0x68] sm:$0xff] %v236_v48 }

// kernel: _lambda_.4
= control target key start
LH: loop header
LB: loop body
LE: loop exit
PB: predicated region body
PF: predicated region fallthrough
CT: control target
= control target key end

     0   :  { %s854_s9 = smov 0   ;;  %s856_s10 = smov 0   ;;  %s996_s0 = inlined_call_operand.vmem [shape: f32[8,16,512], index: 0, kind: input, shape index: {}]   ;;  %s997_s1 = inlined_call_operand.vmem [shape: bf16[128,512], index: 1, kind: input, shape index: {}]   ;;  %s998_s2 = inlined_call_operand.vmem [shape: bf16[8,16,128], index: 2, kind: output, shape index: {}]  }
   0x1   :  { %s858_s11 = smov 0  }
   0x2 LB: > { %s21_s12 = sadd.s32 1, %s831_s10  ;;  %p650_p0 = scmp.ge.s32.totalorder %s835_s11, 1  ;;  %s835_s11 = sphi %s858_s11, %s12_s11   ;;  %s831_s10 = sphi %s856_s10, %s1000_s10   ;;  %s827_s9 = sphi %s854_s9, %s999_s9  }
   0x3   : > { %p22_p1 = scmp.ge.s32.totalorder %s21_s12, 8  ;;  %p134_p2 = scmp.lt.s32.totalorder %s835_s11, 9 }
   0x5   : > { %s1002_s12 = smov (%p22_p1, %s21_s12), 0  ;;  %p135_p3 = pnand %p650_p0, %p134_p2 }
   0x6   : > { %p166_p4 = scmp.lt.s32.totalorder (!%p135_p3), %s827_s9, 7  ;;  %p655_p5 = scmp.ne.s32.totalorder (!%p135_p3), %s827_s9, 0 }
   0x7   : > { %138 = sbr.rel (%p135_p3) target bundleno = 319 (0x13f), region = 28 }
   0xe   : > { %s167_s13 = scalar_select %p166_p4, %s827_s9, 7 }
   0xf   : > { %190 = sbr.rel (%p655_p5) target bundleno = 22 (0x16), region = 32  ;;  %v837_v0 = vmov (!%p655_p5), 0.0  }
  0x10   : > { %s698_s14 = sshll.u32 %s167_s13, 6  ;;  %s699_s15 = sshll.u32 %s167_s13, 3  ;;  %191 = vst [vmem:[#allocation2] sm:$0xff] (!%p655_p5), %v837_v0  ;;  %192 = vst [vmem:[#allocation2 + $0x8] sm:$0xff] (!%p655_p5), %v837_v0 }
  0x11   : > { %s875_s18 = scalar_lea.vmem %s996_s0, %s698_s14  ;;  %s880_s21 = scalar_lea.vmem %s998_s2, %s699_s15  ;;  %193 = vst [vmem:[#allocation3] sm:$0xff] (!%p655_p5), %v837_v0  ;;  %194 = vst [vmem:[#allocation3 + $0x8] sm:$0xff] (!%p655_p5), %v837_v0 }
  0x16 PF: > { %v733_v1 = vld [vmem:[%s997_s1 + $0x4] ss:$16 sps:$4 sm:$0xff]   ;;  %v735_v2 = vld [vmem:[%s997_s1] ss:$16 sps:$4 sm:$0xff]   ;;  %v838_v3 = vmov 0   ;;  %v196_v38 = vld [vmem:[%s875_s18 + $0x8] sm:$0xff] }
  0x17   : > { %430 = vmatprep.mubr.bf16.mxu0 %v838_v3  ;;  %473 = vmatprep.mubr.bf16.mxu1 %v838_v3  ;;  %v736_v4 = vld [vmem:[%s997_s1 + $0x24] ss:$16 sps:$4 sm:$0xff]   ;;  %v738_v5 = vld [vmem:[%s997_s1 + $0x20] ss:$16 sps:$4 sm:$0xff]   ;;  %v744_v7 = vld [vmem:[%s997_s1 + $0xc] ss:$16 sps:$4 sm:$0xff]  }
  0x18   : > { %398 = vmatprep.subr.bf16.mxu0 %v733_v1  ;;  %v739_v6 = vld [vmem:[%s997_s1 + $0x44] ss:$16 sps:$4 sm:$0xff]   ;;  %v747_v8 = vld [vmem:[%s997_s1 + $0x8] ss:$16 sps:$4 sm:$0xff]   ;;  %v741_v9 = vld [vmem:[%s997_s1 + $0x40] ss:$16 sps:$4 sm:$0xff]   ;;  %441 = vmatprep.subr.bf16.mxu1 %v744_v7 }
  0x19   : > { %399 = vmatpush1.bf16.msra.mxu0 %v735_v2  ;;  %v742_v10 = vld [vmem:[%s997_s1 + $0x64] ss:$16 sps:$4 sm:$0xff]   ;;  %442 = vmatpush1.bf16.msra.mxu1 %v747_v8  ;;  %v750_v11 = vld [vmem:[%s997_s1 + $0x2c] ss:$16 sps:$4 sm:$0xff]   ;;  %v753_v12 = vld [vmem:[%s997_s1 + $0x28] ss:$16 sps:$4 sm:$0xff]  }
  0x1a   : > { %400 = vmatprep.subr.bf16.mxu0 %v736_v4  ;;  %443 = vmatprep.subr.bf16.mxu1 %v750_v11  ;;  %v746_v13 = vld [vmem:[%s997_s1 + $0x60] ss:$16 sps:$4 sm:$0xff]   ;;  %v748_v14 = vld [vmem:[%s997_s1 + $0x84] ss:$16 sps:$4 sm:$0xff]   ;;  %v756_v15 = vld [vmem:[%s997_s1 + $0x4c] ss:$16 sps:$4 sm:$0xff]  }
  0x1b   : > { %v759_v16 = vld [vmem:[%s997_s1 + $0x48] ss:$16 sps:$4 sm:$0xff]   ;;  %v762_v17 = vld [vmem:[%s997_s1 + $0x6c] ss:$16 sps:$4 sm:$0xff]   ;;  %v752_v18 = vld [vmem:[%s997_s1 + $0x80] ss:$16 sps:$4 sm:$0xff]  }
  0x1c   : > { %v754_v19 = vld [vmem:[%s997_s1 + $0xa4] ss:$16 sps:$4 sm:$0xff]   ;;  %v765_v20 = vld [vmem:[%s997_s1 + $0x68] ss:$16 sps:$4 sm:$0xff]   ;;  %v768_v21 = vld [vmem:[%s997_s1 + $0x8c] ss:$16 sps:$4 sm:$0xff]  }
  0x1d   : > { %401 = vmatpush1.bf16.msra.mxu0 %v738_v5  ;;  %444 = vmatpush1.bf16.msra.mxu1 %v753_v12  ;;  %v758_v22 = vld [vmem:[%s997_s1 + $0xa0] ss:$16 sps:$4 sm:$0xff]   ;;  %v760_v23 = vld [vmem:[%s997_s1 + $0xc4] ss:$16 sps:$4 sm:$0xff]   ;;  %v771_v24 = vld [vmem:[%s997_s1 + $0x88] ss:$16 sps:$4 sm:$0xff]  }
  0x1e   : > { %402 = vmatprep.subr.bf16.mxu0 %v739_v6  ;;  %445 = vmatprep.subr.bf16.mxu1 %v756_v15  ;;  %v772_v25 = vld [vmem:[%s997_s1 + $0xac] ss:$16 sps:$4 sm:$0xff]   ;;  %v764_v26 = vld [vmem:[%s997_s1 + $0xc0] ss:$16 sps:$4 sm:$0xff]   ;;  %v766_v27 = vld [vmem:[%s997_s1 + $0xe4] ss:$16 sps:$4 sm:$0xff]  }
  0x1f   : > { %v774_v28 = vld [vmem:[%s997_s1 + $0xa8] ss:$16 sps:$4 sm:$0xff]   ;;  %v775_v29 = vld [vmem:[%s997_s1 + $0xcc] ss:$16 sps:$4 sm:$0xff]   ;;  %v770_v30 = vld [vmem:[%s997_s1 + $0xe0] ss:$16 sps:$4 sm:$0xff]  }
  0x20   : > { %v203_v31 = vld [vmem:[#allocation2] sm:$0xff]  ;;  %v204_v32 = vld [vmem:[#allocation2 + $0x8] sm:$0xff]  ;;  %v197_v51 = vld [vmem:[%s875_s18 + $0x10] sm:$0xff] }
  0x21   : > { %403 = vmatpush1.bf16.msra.mxu0 %v741_v9  ;;  %446 = vmatpush1.bf16.msra.mxu1 %v759_v16  ;;  %v777_v33 = vld [vmem:[%s997_s1 + $0xc8] ss:$16 sps:$4 sm:$0xff]   ;;  %v778_v34 = vld [vmem:[%s997_s1 + $0xec] ss:$16 sps:$4 sm:$0xff]   ;;  %v205_v35 = vpack.c.bf16 %v204_v32, %v203_v31  ;;  %v195_v37 = vld [vmem:[%s875_s18] sm:$0xff] }
  0x22   : > { %404 = vmatprep.subr.bf16.mxu0 %v742_v10  ;;  %447 = vmatprep.subr.bf16.mxu1 %v762_v17  ;;  %v780_v36 = vld [vmem:[%s997_s1 + $0xe8] ss:$16 sps:$4 sm:$0xff]   ;;  %v199_v40 = vld [vmem:[%s875_s18 + $0x20] sm:$0xff]  ;;  %v201_v56 = vld [vmem:[%s875_s18 + $0x30] sm:$0xff] }
  0x23   : > { %v200_v43 = vld [vmem:[%s875_s18 + $0x28] sm:$0xff]  ;;  %v198_v58 = vld [vmem:[%s875_s18 + $0x18] sm:$0xff]  ;;  %v530_v15 = vld [vmem:[#allocation3] sm:$0xff] }
  0x24   : > { %v202_v62 = vld [vmem:[%s875_s18 + $0x38] sm:$0xff] }
  0x25   : > { %405 = vmatpush1.bf16.msra.mxu0 %v746_v13  ;;  %448 = vmatpush1.bf16.msra.mxu1 %v765_v20 }
  0x26   : > { %406 = vmatprep.subr.bf16.mxu0 %v748_v14  ;;  %449 = vmatprep.subr.bf16.mxu1 %v768_v21 }
  0x29   : > { %407 = vmatpush1.bf16.msra.mxu0 %v752_v18  ;;  %450 = vmatpush1.bf16.msra.mxu1 %v771_v24 }
  0x2a   : > { %408 = vmatprep.subr.bf16.mxu0 %v754_v19  ;;  %451 = vmatprep.subr.bf16.mxu1 %v772_v25  ;;  %v531_v19 = vld [vmem:[#allocation3 + $0x8] sm:$0xff] }
  0x2d   : > { %409 = vmatpush1.bf16.msra.mxu0 %v758_v22  ;;  %452 = vmatpush1.bf16.msra.mxu1 %v774_v28 }
  0x2e   : > { %410 = vmatprep.subr.bf16.mxu0 %v760_v23  ;;  %453 = vmatprep.subr.bf16.mxu1 %v775_v29 }
  0x31   : > { %411 = vmatpush1.bf16.msra.mxu0 %v764_v26  ;;  %454 = vmatpush1.bf16.msra.mxu1 %v777_v33 }
  0x32   : > { %412 = vmatprep.subr.bf16.mxu0 %v766_v27  ;;  %455 = vmatprep.subr.bf16.mxu1 %v778_v34 }
  0x35   : > { %413 = vmatpush1.bf16.msra.mxu0 %v770_v30  ;;  %456 = vmatpush1.bf16.msra.mxu1 %v780_v36 }
  0x38   : > { %431 = vmatmul.mubr.bf16.vlgmr.msra.gmra.mrb[0].mxu0 %v205_v35  ;;  %474 = vmatmul.mubr.bf16.vlgmr.msra.gmra.mrb[0].mxu1 %v205_v35 }
 0x10b   : > { %v432_v39 = vpop.f32.mrb[0].mxu0  ;;  %v475_v53 = vpop.f32.mrb[0].mxu1 }
 0x10c   : > { %v484_v41 = vadd.f32 %v432_v39, %v195_v37  ;;  %v434_v42 = vpop.f32.mrb[1].mxu0  ;;  %v477_v55 = vpop.f32.mrb[1].mxu1  ;;  %v486_v57 = vadd.f32 %v475_v53, %v197_v51 }
 0x10d   : > { %v485_v44 = vadd.f32 %v434_v42, %v196_v38  ;;  %v436_v45 = vpop.f32.mrb[2].mxu0  ;;  %v479_v59 = vpop.f32.mrb[2].mxu1  ;;  %v487_v63 = vadd.f32 %v477_v55, %v198_v58 }
 0x10e   : > { %v688_v46 = vmul.f32 -1.442695, %v484_v41  ;;  %v488_v47 = vadd.f32 %v436_v45, %v199_v40  ;;  %v438_v48 = vpop.f32.mrb[3].mxu0  ;;  %v481_v60 = vpop.f32.mrb[3].mxu1  ;;  %v490_v61 = vadd.f32 %v479_v59, %v201_v56  ;;  %v690_v0 = vmul.f32 -1.442695, %v486_v57 }
 0x10f   : > { %v689_v49 = vmul.f32 -1.442695, %v485_v44  ;;  %v489_v50 = vadd.f32 %v438_v48, %v200_v43  ;;  %v491_v1 = vadd.f32 %v481_v60, %v202_v62 }
 0x110   : > { %781 = vpow2.f32 %v688_v46  ;;  %v691_v52 = vmul.f32 -1.442695, %v488_v47  ;;  %v693_v2 = vmul.f32 -1.442695, %v490_v61 }
 0x111   : > { %783 = vpow2.f32 %v689_v49  ;;  %v692_v54 = vmul.f32 -1.442695, %v489_v50 }
 0x112   : > { %785 = vpow2.f32 %v691_v52 }
 0x113   : > { %787 = vpow2.f32 %v692_v54 }
 0x114   : > { %789 = vtanh.f32 %v487_v63 }
 0x115   : > { %791 = vpow2.f32 %v690_v0 }
 0x116   : > { %793 = vtanh.f32 %v491_v1 }
 0x117   : > { %795 = vpow2.f32 %v693_v2 }
 0x11a   : > { %v782_v3 = vpop.eup %781 }
 0x11b   : > { %v784_v4 = vpop.eup %783  ;;  %v510_v5 = vadd.f32 1.0, %v782_v3 }
 0x11c   : > { %v786_v6 = vpop.eup %785  ;;  %v511_v7 = vadd.f32 1.0, %v784_v4 }
 0x11d   : > { %v788_v8 = vpop.eup %787  ;;  %797 = vrcp.f32 %v510_v5  ;;  %v513_v9 = vadd.f32 1.0, %v786_v6 }
 0x11e   : > { %799 = vrcp.f32 %v511_v7  ;;  %v514_v10 = vadd.f32 1.0, %v788_v8  ;;  %v790_v11 = vpop.eup %789 }
 0x11f   : > { %801 = vrcp.f32 %v513_v9  ;;  %v792_v12 = vpop.eup %791 }
 0x120   : > { %803 = vrcp.f32 %v514_v10  ;;  %v794_v13 = vpop.eup %793  ;;  %v512_v17 = vadd.f32 1.0, %v792_v12 }
 0x121   : > { %v796_v14 = vpop.eup %795 }
 0x122   : > { %v515_v24 = vadd.f32 1.0, %v796_v14  ;;  %805 = vrcp.f32 %v512_v17 }
 0x127   : > { %v798_v16 = vpop.eup %797 }
 0x128   : > { %v800_v18 = vpop.eup %799  ;;  %v534_v20 = vmul.f32 %v798_v16, %v790_v11 }
 0x129   : > { %v802_v21 = vpop.eup %801  ;;  %v532_v22 = vmul.f32 %v800_v18, %v530_v15 }
 0x12a   : > { %v804_v23 = vpop.eup %803  ;;  %v535_v25 = vmul.f32 %v802_v21, %v794_v13 }
 0x12b   : > { %v533_v26 = vmul.f32 %v804_v23, %v531_v19  ;;  %v536_v27 = vadd.f32 %v534_v20, %v532_v22 }
 0x12c   : > { %v806_v29 = vpop.eup %805 }
 0x12d   : > { %807 = vtanh.f32 %v536_v27  ;;  %542 = vst [vmem:[#allocation3] sm:$0xff] %v536_v27  ;;  %v537_v28 = vadd.f32 %v535_v25, %v533_v26 }
 0x12e   : > { %809 = vrcp.f32 %v515_v24 }
 0x12f   : > { %811 = vtanh.f32 %v537_v28  ;;  %543 = vst [vmem:[#allocation3 + $0x8] sm:$0xff] %v537_v28 }
 0x137   : > { %v808_v30 = vpop.eup %807 }
 0x138   : > { %v810_v31 = vpop.eup %809  ;;  %v540_v32 = vmul.f32 %v808_v30, %v806_v29 }
 0x139   : > { %v812_v33 = vpop.eup %811 }
 0x13a   : > { %544 = vst [vmem:[#allocation2] sm:$0xff] %v540_v32  ;;  %v541_v34 = vmul.f32 %v812_v33, %v810_v31 }
 0x13c   : > { %545 = vst [vmem:[#allocation2 + $0x8] sm:$0xff] %v541_v34  ;;  %v705_v35 = vpack.c.bf16 %v541_v34, %v540_v32 }
 0x13e   : > { %706 = vst [vmem:[%s880_s21] sm:$0xff] %v705_v35  }
 0x13f PF: > { %s12_s11 = sadd.s32 1, %s835_s11   ;;  %s999_s9 = smov %s831_s10 }
 0x140   : > { %p9_p6 = scmp.ge.s32.totalorder %s12_s11, 10   ;;  %s1000_s10 = smov %s1002_s12 }
 0x142   :  { %11 = sbr.rel (!%p9_p6) target bundleno = 2 (0x2), region = 62 }

// kernel: _lambda_.3
= control target key start
LH: loop header
LB: loop body
LE: loop exit
PB: predicated region body
PF: predicated region fallthrough
CT: control target
= control target key end

     0   :  { %v684_v1 = vmov 0   ;;  %v65_v41 = vlaneseq  ;;  %s1108_s1 = inlined_call_operand.vmem [shape: bf16[128,512], index: 1, kind: input, shape index: {}]   ;;  %s1109_s0 = inlined_call_operand.vmem [shape: bf16[128,128], index: 0, kind: input, shape index: {}]   ;;  %s1110_s2 = inlined_call_operand.vmem [shape: f32[1,512], index: 2, kind: input, shape index: {}]   ;;  %s1111_s3 = inlined_call_operand.vmem [shape: f32[128,512], index: 3, kind: output, shape index: {}]  }
   0x1   :  { %v628_v0 = vld [vmem:[%s1108_s1 + $0x4] ss:$16 sps:$4 sm:$0xff]   ;;  %325 = vmatprep.mubr.bf16.mxu0 %v684_v1  ;;  %438 = vmatprep.mubr.bf16.mxu1 %v684_v1  ;;  %v630_v2 = vld [vmem:[%s1108_s1 + $0xc] ss:$16 sps:$4 sm:$0xff]   ;;  %v632_v3 = vld [vmem:[%s1108_s1] ss:$16 sps:$4 sm:$0xff]  }
   0x2   :  { %293 = vmatprep.subr.bf16.mxu0 %v628_v0  ;;  %v633_v4 = vld [vmem:[%s1108_s1 + $0x8] ss:$16 sps:$4 sm:$0xff]   ;;  %406 = vmatprep.subr.bf16.mxu1 %v630_v2  ;;  %v634_v5 = vld [vmem:[%s1108_s1 + $0x24] ss:$16 sps:$4 sm:$0xff]   ;;  %v636_v6 = vld [vmem:[%s1108_s1 + $0x2c] ss:$16 sps:$4 sm:$0xff]  }
   0x3   :  { %294 = vmatpush1.bf16.msra.mxu0 %v632_v3  ;;  %407 = vmatpush1.bf16.msra.mxu1 %v633_v4  ;;  %v638_v7 = vld [vmem:[%s1108_s1 + $0x20] ss:$16 sps:$4 sm:$0xff]   ;;  %v639_v8 = vld [vmem:[%s1108_s1 + $0x28] ss:$16 sps:$4 sm:$0xff]   ;;  %v640_v9 = vld [vmem:[%s1108_s1 + $0x44] ss:$16 sps:$4 sm:$0xff]  }
   0x4   :  { %295 = vmatprep.subr.bf16.mxu0 %v634_v5  ;;  %408 = vmatprep.subr.bf16.mxu1 %v636_v6  ;;  %v642_v10 = vld [vmem:[%s1108_s1 + $0x4c] ss:$16 sps:$4 sm:$0xff]   ;;  %v644_v11 = vld [vmem:[%s1108_s1 + $0x40] ss:$16 sps:$4 sm:$0xff]   ;;  %v645_v12 = vld [vmem:[%s1108_s1 + $0x48] ss:$16 sps:$4 sm:$0xff]  }
   0x5   :  { %v646_v13 = vld [vmem:[%s1108_s1 + $0x64] ss:$16 sps:$4 sm:$0xff]   ;;  %v648_v14 = vld [vmem:[%s1108_s1 + $0x6c] ss:$16 sps:$4 sm:$0xff]   ;;  %v650_v15 = vld [vmem:[%s1108_s1 + $0x60] ss:$16 sps:$4 sm:$0xff]  }
   0x6   :  { %v651_v16 = vld [vmem:[%s1108_s1 + $0x68] ss:$16 sps:$4 sm:$0xff]   ;;  %v652_v17 = vld [vmem:[%s1108_s1 + $0x84] ss:$16 sps:$4 sm:$0xff]   ;;  %v654_v18 = vld [vmem:[%s1108_s1 + $0x8c] ss:$16 sps:$4 sm:$0xff]  }
   0x7   :  { %296 = vmatpush1.bf16.msra.mxu0 %v638_v7  ;;  %409 = vmatpush1.bf16.msra.mxu1 %v639_v8  ;;  %v656_v19 = vld [vmem:[%s1108_s1 + $0x80] ss:$16 sps:$4 sm:$0xff]   ;;  %v657_v20 = vld [vmem:[%s1108_s1 + $0x88] ss:$16 sps:$4 sm:$0xff]   ;;  %v658_v21 = vld [vmem:[%s1108_s1 + $0xa4] ss:$16 sps:$4 sm:$0xff]  }
   0x8   :  { %297 = vmatprep.subr.bf16.mxu0 %v640_v9  ;;  %410 = vmatprep.subr.bf16.mxu1 %v642_v10  ;;  %v660_v22 = vld [vmem:[%s1108_s1 + $0xac] ss:$16 sps:$4 sm:$0xff]   ;;  %v662_v23 = vld [vmem:[%s1108_s1 + $0xa0] ss:$16 sps:$4 sm:$0xff]   ;;  %v663_v24 = vld [vmem:[%s1108_s1 + $0xa8] ss:$16 sps:$4 sm:$0xff]  }
   0x9   :  { %v664_v25 = vld [vmem:[%s1108_s1 + $0xc4] ss:$16 sps:$4 sm:$0xff]   ;;  %v666_v26 = vld [vmem:[%s1108_s1 + $0xcc] ss:$16 sps:$4 sm:$0xff]   ;;  %v668_v27 = vld [vmem:[%s1108_s1 + $0xc0] ss:$16 sps:$4 sm:$0xff]  }
   0xa   :  { %v669_v28 = vld [vmem:[%s1108_s1 + $0xc8] ss:$16 sps:$4 sm:$0xff]   ;;  %v670_v29 = vld [vmem:[%s1108_s1 + $0xe4] ss:$16 sps:$4 sm:$0xff]   ;;  %v672_v30 = vld [vmem:[%s1108_s1 + $0xec] ss:$16 sps:$4 sm:$0xff]  }
   0xb   :  { %298 = vmatpush1.bf16.msra.mxu0 %v644_v11  ;;  %411 = vmatpush1.bf16.msra.mxu1 %v645_v12  ;;  %v674_v31 = vld [vmem:[%s1108_s1 + $0xe0] ss:$16 sps:$4 sm:$0xff]   ;;  %v675_v32 = vld [vmem:[%s1108_s1 + $0xe8] ss:$16 sps:$4 sm:$0xff]   ;;  %v66_v42 = vshrl.u32 %v65_v41, 7 }
   0xc   :  { %299 = vmatprep.subr.bf16.mxu0 %v646_v13  ;;  %412 = vmatprep.subr.bf16.mxu1 %v648_v14  ;;  %v676_v33 = vld [vmem:[%s1109_s0] sm:$0xff]   ;;  %v677_v34 = vld [vmem:[%s1109_s0 + $0x8] sm:$0xff]   ;;  %v678_v35 = vld [vmem:[%s1109_s0 + $0x10] sm:$0xff]  }
   0xd   :  { %v679_v36 = vld [vmem:[%s1109_s0 + $0x18] sm:$0xff]   ;;  %v680_v37 = vld [vmem:[%s1109_s0 + $0x20] sm:$0xff]   ;;  %v681_v38 = vld [vmem:[%s1109_s0 + $0x28] sm:$0xff]   ;;  %v67_v43 = vsub.s32 0, %v66_v42  ;;  %v75_v44 = vsub.s32 2, %v66_v42  ;;  %v71_v46 = vsub.s32 1, %v66_v42 }
   0xe   :  { %v682_v39 = vld [vmem:[%s1109_s0 + $0x30] sm:$0xff]   ;;  %v683_v40 = vld [vmem:[%s1109_s0 + $0x38] sm:$0xff]   ;;  %v63_v45 = vld [vmem:[%s1110_s2] sm:$0xf]  ;;  %v79_v47 = vsub.s32 3, %v66_v42 }
   0xf   :  { %300 = vmatpush1.bf16.msra.mxu0 %v650_v15  ;;  %413 = vmatpush1.bf16.msra.mxu1 %v651_v16  ;;  %v844_v48 = vrot.slane %v63_v45, %v67_v43  ;;  %v846_v49 = vrot.slane %v63_v45, %v75_v44  ;;  %v848_v50 = vrot.slane %v63_v45, %v71_v46 }
  0x10   :  { %301 = vmatprep.subr.bf16.mxu0 %v652_v17  ;;  %414 = vmatprep.subr.bf16.mxu1 %v654_v18  ;;  %v850_v51 = vrot.slane %v63_v45, %v79_v47 }
  0x13   :  { %302 = vmatpush1.bf16.msra.mxu0 %v656_v19  ;;  %415 = vmatpush1.bf16.msra.mxu1 %v657_v20 }
  0x14   :  { %303 = vmatprep.subr.bf16.mxu0 %v658_v21  ;;  %416 = vmatprep.subr.bf16.mxu1 %v660_v22 }
  0x17   :  { %304 = vmatpush1.bf16.msra.mxu0 %v662_v23  ;;  %417 = vmatpush1.bf16.msra.mxu1 %v663_v24 }
  0x18   :  { %305 = vmatprep.subr.bf16.mxu0 %v664_v25  ;;  %418 = vmatprep.subr.bf16.mxu1 %v666_v26 }
  0x1b   :  { %306 = vmatpush1.bf16.msra.mxu0 %v668_v27  ;;  %419 = vmatpush1.bf16.msra.mxu1 %v669_v28 }
  0x1c   :  { %307 = vmatprep.subr.bf16.mxu0 %v670_v29  ;;  %420 = vmatprep.subr.bf16.mxu1 %v672_v30 }
  0x1f   :  { %308 = vmatpush1.bf16.msra.mxu0 %v674_v31  ;;  %421 = vmatpush1.bf16.msra.mxu1 %v675_v32 }
  0x22   :  { %326 = vmatmul.mubr.bf16.vlgmr.msra.gmra.mrb[0].mxu0 %v676_v33  ;;  %439 = vmatmul.mubr.bf16.vlgmr.msra.gmra.mrb[0].mxu1 %v676_v33 }
  0x23   :  { %335 = vmatprep.mubr.bf16.mxu0 %v684_v1  ;;  %448 = vmatprep.mubr.bf16.mxu1 %v684_v1 }
  0x2a   :  { %336 = vmatmul.mubr.bf16.gmra.mrb[4].mxu0 %v677_v34  ;;  %449 = vmatmul.mubr.bf16.gmra.mrb[4].mxu1 %v677_v34 }
  0x2b   :  { %345 = vmatprep.mubr.bf16.mxu0 %v684_v1  ;;  %458 = vmatprep.mubr.bf16.mxu1 %v684_v1 }
  0x32   :  { %346 = vmatmul.mubr.bf16.gmra.mrb[8].mxu0 %v678_v35  ;;  %459 = vmatmul.mubr.bf16.gmra.mrb[8].mxu1 %v678_v35 }
  0x33   :  { %355 = vmatprep.mubr.bf16.mxu0 %v684_v1  ;;  %468 = vmatprep.mubr.bf16.mxu1 %v684_v1 }
  0x3a   :  { %356 = vmatmul.mubr.bf16.gmra.mrb[12].mxu0 %v679_v36  ;;  %469 = vmatmul.mubr.bf16.gmra.mrb[12].mxu1 %v679_v36 }
  0x3b   :  { %365 = vmatprep.mubr.bf16.mxu0 %v684_v1  ;;  %478 = vmatprep.mubr.bf16.mxu1 %v684_v1 }
  0x42   :  { %366 = vmatmul.mubr.bf16.gmra.mrb[16].mxu0 %v680_v37  ;;  %479 = vmatmul.mubr.bf16.gmra.mrb[16].mxu1 %v680_v37 }
  0x43   :  { %375 = vmatprep.mubr.bf16.mxu0 %v684_v1  ;;  %488 = vmatprep.mubr.bf16.mxu1 %v684_v1 }
  0x4a   :  { %376 = vmatmul.mubr.bf16.gmra.mrb[20].mxu0 %v681_v38  ;;  %489 = vmatmul.mubr.bf16.gmra.mrb[20].mxu1 %v681_v38 }
  0x4b   :  { %385 = vmatprep.mubr.bf16.mxu0 %v684_v1  ;;  %498 = vmatprep.mubr.bf16.mxu1 %v684_v1 }
  0x52   :  { %386 = vmatmul.mubr.bf16.gmra.mrb[24].mxu0 %v682_v39  ;;  %499 = vmatmul.mubr.bf16.gmra.mrb[24].mxu1 %v682_v39 }
  0x53   :  { %395 = vmatprep.mubr.bf16.mxu0 %v684_v1  ;;  %508 = vmatprep.mubr.bf16.mxu1 %v684_v1 }
  0x5a   :  { %396 = vmatmul.mubr.bf16.gmra.mrb[28].mxu0 %v683_v40  ;;  %509 = vmatmul.mubr.bf16.gmra.mrb[28].mxu1 %v683_v40 }
  0xf5   :  { %v327_v52 = vpop.f32.mrb[0].mxu0  ;;  %v440_v53 = vpop.f32.mrb[0].mxu1 }
  0xf6   :  { %v328_v54 = vadd.f32 %v327_v52, %v844_v48  ;;  %v441_v55 = vadd.f32 %v440_v53, %v846_v49  ;;  %v329_v56 = vpop.f32.mrb[1].mxu0  ;;  %v442_v57 = vpop.f32.mrb[1].mxu1 }
  0xf7   :  { %v330_v58 = vadd.f32 %v329_v56, %v848_v50  ;;  %v443_v59 = vadd.f32 %v442_v57, %v850_v51  ;;  %v331_v60 = vpop.f32.mrb[2].mxu0  ;;  %v444_v61 = vpop.f32.mrb[2].mxu1 }
  0xf8   :  { %519 = vst [vmem:[%s1111_s3] sm:$0xff] %v328_v54  ;;  %521 = vst [vmem:[%s1111_s3 + $0x10] sm:$0xff] %v441_v55  ;;  %v332_v62 = vadd.f32 %v331_v60, %v844_v48  ;;  %v445_v63 = vadd.f32 %v444_v61, %v846_v49  ;;  %v333_v0 = vpop.f32.mrb[3].mxu0  ;;  %v446_v1 = vpop.f32.mrb[3].mxu1 }
  0xf9   :  { %520 = vst [vmem:[%s1111_s3 + $0x8] sm:$0xff] %v330_v58  ;;  %522 = vst [vmem:[%s1111_s3 + $0x18] sm:$0xff] %v443_v59  ;;  %v334_v2 = vadd.f32 %v333_v0, %v848_v50  ;;  %v447_v3 = vadd.f32 %v446_v1, %v850_v51 }
  0xfa   :  { %523 = vst [vmem:[%s1111_s3 + $0x20] sm:$0xff] %v332_v62  ;;  %525 = vst [vmem:[%s1111_s3 + $0x30] sm:$0xff] %v445_v63 }
  0xfb   :  { %524 = vst [vmem:[%s1111_s3 + $0x28] sm:$0xff] %v334_v2  ;;  %526 = vst [vmem:[%s1111_s3 + $0x38] sm:$0xff] %v447_v3 }
  0xfd   :  { %v337_v4 = vpop.f32.mrb[4].mxu0  ;;  %v450_v5 = vpop.f32.mrb[4].mxu1 }
  0xfe   :  { %v338_v6 = vadd.f32 %v337_v4, %v844_v48  ;;  %v451_v7 = vadd.f32 %v450_v5, %v846_v49  ;;  %v339_v8 = vpop.f32.mrb[5].mxu0  ;;  %v452_v9 = vpop.f32.mrb[5].mxu1 }
  0xff   :  { %v340_v10 = vadd.f32 %v339_v8, %v848_v50  ;;  %v453_v11 = vadd.f32 %v452_v9, %v850_v51  ;;  %v341_v12 = vpop.f32.mrb[6].mxu0  ;;  %v454_v13 = vpop.f32.mrb[6].mxu1 }
 0x100   :  { %527 = vst [vmem:[%s1111_s3 + $0x40] sm:$0xff] %v338_v6  ;;  %529 = vst [vmem:[%s1111_s3 + $0x50] sm:$0xff] %v451_v7  ;;  %v342_v14 = vadd.f32 %v341_v12, %v844_v48  ;;  %v455_v15 = vadd.f32 %v454_v13, %v846_v49  ;;  %v343_v16 = vpop.f32.mrb[7].mxu0  ;;  %v456_v17 = vpop.f32.mrb[7].mxu1 }
 0x101   :  { %528 = vst [vmem:[%s1111_s3 + $0x48] sm:$0xff] %v340_v10  ;;  %530 = vst [vmem:[%s1111_s3 + $0x58] sm:$0xff] %v453_v11  ;;  %v344_v18 = vadd.f32 %v343_v16, %v848_v50  ;;  %v457_v19 = vadd.f32 %v456_v17, %v850_v51 }
 0x102   :  { %531 = vst [vmem:[%s1111_s3 + $0x60] sm:$0xff] %v342_v14  ;;  %533 = vst [vmem:[%s1111_s3 + $0x70] sm:$0xff] %v455_v15 }
 0x103   :  { %532 = vst [vmem:[%s1111_s3 + $0x68] sm:$0xff] %v344_v18  ;;  %534 = vst [vmem:[%s1111_s3 + $0x78] sm:$0xff] %v457_v19 }
 0x105   :  { %v347_v20 = vpop.f32.mrb[8].mxu0  ;;  %v460_v21 = vpop.f32.mrb[8].mxu1 }
 0x106   :  { %v348_v22 = vadd.f32 %v347_v20, %v844_v48  ;;  %v461_v23 = vadd.f32 %v460_v21, %v846_v49  ;;  %v349_v24 = vpop.f32.mrb[9].mxu0  ;;  %v462_v25 = vpop.f32.mrb[9].mxu1 }
 0x107   :  { %v350_v26 = vadd.f32 %v349_v24, %v848_v50  ;;  %v463_v27 = vadd.f32 %v462_v25, %v850_v51  ;;  %v351_v28 = vpop.f32.mrb[10].mxu0  ;;  %v464_v29 = vpop.f32.mrb[10].mxu1 }
 0x108   :  { %535 = vst [vmem:[%s1111_s3 + $0x80] sm:$0xff] %v348_v22  ;;  %537 = vst [vmem:[%s1111_s3 + $0x90] sm:$0xff] %v461_v23  ;;  %v352_v30 = vadd.f32 %v351_v28, %v844_v48  ;;  %v465_v31 = vadd.f32 %v464_v29, %v846_v49  ;;  %v353_v32 = vpop.f32.mrb[11].mxu0  ;;  %v466_v33 = vpop.f32.mrb[11].mxu1 }
 0x109   :  { %536 = vst [vmem:[%s1111_s3 + $0x88] sm:$0xff] %v350_v26  ;;  %538 = vst [vmem:[%s1111_s3 + $0x98] sm:$0xff] %v463_v27  ;;  %v354_v34 = vadd.f32 %v353_v32, %v848_v50  ;;  %v467_v35 = vadd.f32 %v466_v33, %v850_v51 }
 0x10a   :  { %539 = vst [vmem:[%s1111_s3 + $0xa0] sm:$0xff] %v352_v30  ;;  %541 = vst [vmem:[%s1111_s3 + $0xb0] sm:$0xff] %v465_v31 }
 0x10b   :  { %540 = vst [vmem:[%s1111_s3 + $0xa8] sm:$0xff] %v354_v34  ;;  %542 = vst [vmem:[%s1111_s3 + $0xb8] sm:$0xff] %v467_v35 }
 0x10d   :  { %v357_v36 = vpop.f32.mrb[12].mxu0  ;;  %v470_v37 = vpop.f32.mrb[12].mxu1 }
 0x10e   :  { %v358_v38 = vadd.f32 %v357_v36, %v844_v48  ;;  %v471_v39 = vadd.f32 %v470_v37, %v846_v49  ;;  %v359_v40 = vpop.f32.mrb[13].mxu0  ;;  %v472_v41 = vpop.f32.mrb[13].mxu1 }
 0x10f   :  { %v360_v42 = vadd.f32 %v359_v40, %v848_v50  ;;  %v473_v43 = vadd.f32 %v472_v41, %v850_v51  ;;  %v361_v44 = vpop.f32.mrb[14].mxu0  ;;  %v474_v45 = vpop.f32.mrb[14].mxu1 }
 0x110   :  { %543 = vst [vmem:[%s1111_s3 + $0xc0] sm:$0xff] %v358_v38  ;;  %545 = vst [vmem:[%s1111_s3 + $0xd0] sm:$0xff] %v471_v39  ;;  %v362_v46 = vadd.f32 %v361_v44, %v844_v48  ;;  %v475_v47 = vadd.f32 %v474_v45, %v846_v49  ;;  %v363_v52 = vpop.f32.mrb[15].mxu0  ;;  %v476_v53 = vpop.f32.mrb[15].mxu1 }
 0x111   :  { %544 = vst [vmem:[%s1111_s3 + $0xc8] sm:$0xff] %v360_v42  ;;  %546 = vst [vmem:[%s1111_s3 + $0xd8] sm:$0xff] %v473_v43  ;;  %v364_v54 = vadd.f32 %v363_v52, %v848_v50  ;;  %v477_v55 = vadd.f32 %v476_v53, %v850_v51 }
 0x112   :  { %547 = vst [vmem:[%s1111_s3 + $0xe0] sm:$0xff] %v362_v46  ;;  %549 = vst [vmem:[%s1111_s3 + $0xf0] sm:$0xff] %v475_v47 }
 0x113   :  { %548 = vst [vmem:[%s1111_s3 + $0xe8] sm:$0xff] %v364_v54  ;;  %550 = vst [vmem:[%s1111_s3 + $0xf8] sm:$0xff] %v477_v55 }
 0x115   :  { %v367_v56 = vpop.f32.mrb[16].mxu0  ;;  %v480_v57 = vpop.f32.mrb[16].mxu1 }
 0x116   :  { %v368_v58 = vadd.f32 %v367_v56, %v844_v48  ;;  %v481_v59 = vadd.f32 %v480_v57, %v846_v49  ;;  %v369_v60 = vpop.f32.mrb[17].mxu0  ;;  %v482_v61 = vpop.f32.mrb[17].mxu1 }
 0x117   :  { %v370_v62 = vadd.f32 %v369_v60, %v848_v50  ;;  %v483_v63 = vadd.f32 %v482_v61, %v850_v51  ;;  %v371_v0 = vpop.f32.mrb[18].mxu0  ;;  %v484_v1 = vpop.f32.mrb[18].mxu1 }
 0x118   :  { %551 = vst [vmem:[%s1111_s3 + $0x100] sm:$0xff] %v368_v58  ;;  %553 = vst [vmem:[%s1111_s3 + $0x110] sm:$0xff] %v481_v59  ;;  %v372_v2 = vadd.f32 %v371_v0, %v844_v48  ;;  %v485_v3 = vadd.f32 %v484_v1, %v846_v49  ;;  %v373_v4 = vpop.f32.mrb[19].mxu0  ;;  %v486_v5 = vpop.f32.mrb[19].mxu1 }
 0x119   :  { %552 = vst [vmem:[%s1111_s3 + $0x108] sm:$0xff] %v370_v62  ;;  %554 = vst [vmem:[%s1111_s3 + $0x118] sm:$0xff] %v483_v63  ;;  %v374_v6 = vadd.f32 %v373_v4, %v848_v50  ;;  %v487_v7 = vadd.f32 %v486_v5, %v850_v51 }
 0x11a   :  { %555 = vst [vmem:[%s1111_s3 + $0x120] sm:$0xff] %v372_v2  ;;  %557 = vst [vmem:[%s1111_s3 + $0x130] sm:$0xff] %v485_v3 }
 0x11b   :  { %556 = vst [vmem:[%s1111_s3 + $0x128] sm:$0xff] %v374_v6  ;;  %558 = vst [vmem:[%s1111_s3 + $0x138] sm:$0xff] %v487_v7 }
 0x11d   :  { %v377_v8 = vpop.f32.mrb[20].mxu0  ;;  %v490_v9 = vpop.f32.mrb[20].mxu1 }
 0x11e   :  { %v378_v10 = vadd.f32 %v377_v8, %v844_v48  ;;  %v491_v11 = vadd.f32 %v490_v9, %v846_v49  ;;  %v379_v12 = vpop.f32.mrb[21].mxu0  ;;  %v492_v13 = vpop.f32.mrb[21].mxu1 }
 0x11f   :  { %v380_v14 = vadd.f32 %v379_v12, %v848_v50  ;;  %v493_v15 = vadd.f32 %v492_v13, %v850_v51  ;;  %v381_v16 = vpop.f32.mrb[22].mxu0  ;;  %v494_v17 = vpop.f32.mrb[22].mxu1 }
 0x120   :  { %559 = vst [vmem:[%s1111_s3 + $0x140] sm:$0xff] %v378_v10  ;;  %561 = vst [vmem:[%s1111_s3 + $0x150] sm:$0xff] %v491_v11  ;;  %v382_v18 = vadd.f32 %v381_v16, %v844_v48  ;;  %v495_v19 = vadd.f32 %v494_v17, %v846_v49  ;;  %v383_v20 = vpop.f32.mrb[23].mxu0  ;;  %v496_v21 = vpop.f32.mrb[23].mxu1 }
 0x121   :  { %560 = vst [vmem:[%s1111_s3 + $0x148] sm:$0xff] %v380_v14  ;;  %562 = vst [vmem:[%s1111_s3 + $0x158] sm:$0xff] %v493_v15  ;;  %v384_v22 = vadd.f32 %v383_v20, %v848_v50  ;;  %v497_v23 = vadd.f32 %v496_v21, %v850_v51 }
 0x122   :  { %563 = vst [vmem:[%s1111_s3 + $0x160] sm:$0xff] %v382_v18  ;;  %565 = vst [vmem:[%s1111_s3 + $0x170] sm:$0xff] %v495_v19 }
 0x123   :  { %564 = vst [vmem:[%s1111_s3 + $0x168] sm:$0xff] %v384_v22  ;;  %566 = vst [vmem:[%s1111_s3 + $0x178] sm:$0xff] %v497_v23 }
 0x125   :  { %v387_v24 = vpop.f32.mrb[24].mxu0  ;;  %v500_v25 = vpop.f32.mrb[24].mxu1 }
 0x126   :  { %v388_v26 = vadd.f32 %v387_v24, %v844_v48  ;;  %v501_v27 = vadd.f32 %v500_v25, %v846_v49  ;;  %v389_v28 = vpop.f32.mrb[25].mxu0  ;;  %v502_v29 = vpop.f32.mrb[25].mxu1 }
 0x127   :  { %v390_v30 = vadd.f32 %v389_v28, %v848_v50  ;;  %v503_v31 = vadd.f32 %v502_v29, %v850_v51  ;;  %v391_v32 = vpop.f32.mrb[26].mxu0  ;;  %v504_v33 = vpop.f32.mrb[26].mxu1 }
 0x128   :  { %567 = vst [vmem:[%s1111_s3 + $0x180] sm:$0xff] %v388_v26  ;;  %569 = vst [vmem:[%s1111_s3 + $0x190] sm:$0xff] %v501_v27  ;;  %v392_v34 = vadd.f32 %v391_v32, %v844_v48  ;;  %v505_v35 = vadd.f32 %v504_v33, %v846_v49  ;;  %v393_v36 = vpop.f32.mrb[27].mxu0  ;;  %v506_v37 = vpop.f32.mrb[27].mxu1 }
 0x129   :  { %568 = vst [vmem:[%s1111_s3 + $0x188] sm:$0xff] %v390_v30  ;;  %570 = vst [vmem:[%s1111_s3 + $0x198] sm:$0xff] %v503_v31  ;;  %v394_v38 = vadd.f32 %v393_v36, %v848_v50  ;;  %v507_v39 = vadd.f32 %v506_v37, %v850_v51 }
 0x12a   :  { %571 = vst [vmem:[%s1111_s3 + $0x1a0] sm:$0xff] %v392_v34  ;;  %573 = vst [vmem:[%s1111_s3 + $0x1b0] sm:$0xff] %v505_v35 }
 0x12b   :  { %572 = vst [vmem:[%s1111_s3 + $0x1a8] sm:$0xff] %v394_v38  ;;  %574 = vst [vmem:[%s1111_s3 + $0x1b8] sm:$0xff] %v507_v39 }
 0x12d   :  { %v397_v40 = vpop.f32.mrb[28].mxu0  ;;  %v510_v41 = vpop.f32.mrb[28].mxu1 }
 0x12e   :  { %v398_v42 = vadd.f32 %v397_v40, %v844_v48  ;;  %v511_v43 = vadd.f32 %v510_v41, %v846_v49  ;;  %v399_v44 = vpop.f32.mrb[29].mxu0  ;;  %v512_v45 = vpop.f32.mrb[29].mxu1 }
 0x12f   :  { %v400_v46 = vadd.f32 %v399_v44, %v848_v50  ;;  %v513_v47 = vadd.f32 %v512_v45, %v850_v51  ;;  %v401_v52 = vpop.f32.mrb[30].mxu0  ;;  %v514_v53 = vpop.f32.mrb[30].mxu1 }
 0x130   :  { %575 = vst [vmem:[%s1111_s3 + $0x1c0] sm:$0xff] %v398_v42  ;;  %577 = vst [vmem:[%s1111_s3 + $0x1d0] sm:$0xff] %v511_v43  ;;  %v402_v54 = vadd.f32 %v401_v52, %v844_v48  ;;  %v515_v55 = vadd.f32 %v514_v53, %v846_v49  ;;  %v403_v56 = vpop.f32.mrb[31].mxu0  ;;  %v516_v57 = vpop.f32.mrb[31].mxu1 }
 0x131   :  { %576 = vst [vmem:[%s1111_s3 + $0x1c8] sm:$0xff] %v400_v46  ;;  %578 = vst [vmem:[%s1111_s3 + $0x1d8] sm:$0xff] %v513_v47  ;;  %v404_v58 = vadd.f32 %v403_v56, %v848_v50  ;;  %v517_v59 = vadd.f32 %v516_v57, %v850_v51 }
 0x132   :  { %579 = vst [vmem:[%s1111_s3 + $0x1e0] sm:$0xff] %v402_v54  ;;  %581 = vst [vmem:[%s1111_s3 + $0x1f0] sm:$0xff] %v515_v55 }
 0x133   :  { %580 = vst [vmem:[%s1111_s3 + $0x1e8] sm:$0xff] %v404_v58  ;;  %582 = vst [vmem:[%s1111_s3 + $0x1f8] sm:$0xff] %v517_v59 }

</bundles_post_ra>
